<compile_context>
chip_gen: v5e
topology: v5e:2x2
jax: 0.10.0
libtpu: 0.0.40
codegen_flags: <defaults>
</compile_context>

<pallas_src>
import functools
import math

import jax
import jax.numpy as jnp
import numpy as np
from jax.experimental import pallas as pl
from jax.experimental.pallas import tpu as pltpu


def _layernorm(x, gamma, beta, eps=1e-5):
    mu = jnp.mean(x, axis=-1, keepdims=True)
    xc = x - mu
    var = jnp.mean(xc * xc, axis=-1, keepdims=True)
    return xc * jax.lax.rsqrt(var + eps) * gamma + beta


# ---------------------------------------------------------------------------
# Fused kernel: grid axis = encoder layer.  x lives in VMEM scratch.
# ---------------------------------------------------------------------------
def _fused_kernel(x_in_ref, lin_w_ref, lin_b_ref,
                  wqkv_ref, bqkv_ref, wo_ref, bo_ref,
                  w1_ref, b1_ref, w2_ref, b2_ref,
                  g1_ref, be1_ref, g2_ref, be2_ref,
                  o_ref, x_scr,
                  *, nheads, mm_dtype):
    layer = pl.program_id(0)
    B, V, D = x_scr.shape
    hd = D // nheads
    scale = 1.0 / math.sqrt(hd)

    def mm(a, b):
        # MXU matmul with (optionally) bf16 operands and f32 accumulation.
        return jnp.dot(a.astype(mm_dtype), b.astype(mm_dtype),
                       preferred_element_type=jnp.float32)

    # --- layer 0: input Linear(view_channels -> d_model) -------------------
    @pl.when(layer == 0)
    def _():
        x0 = mm(x_in_ref[...], lin_w_ref[...]) + lin_b_ref[...]   # (B*V, D)
        x_scr[...] = x0.reshape(B, V, D)

    x2 = x_scr[...].reshape(B * V, D)                             # f32 residual

    # --- multi-head self-attention (batched over B) -------------------------
    qkv = mm(x2, wqkv_ref[0]) + bqkv_ref[0]                       # (B*V, 3D)
    qkv3 = qkv.reshape(B, V, 3 * D)

    head_outs = []
    for h in range(nheads):                                       # static, small
        qh = qkv3[:, :, h * hd:(h + 1) * hd]                      # (B, V, hd)
        kh = qkv3[:, :, D + h * hd:D + (h + 1) * hd]
        vh = qkv3[:, :, 2 * D + h * hd:2 * D + (h + 1) * hd]
        s = jnp.einsum("bqd,bkd->bqk",
                       qh.astype(mm_dtype), kh.astype(mm_dtype),
                       preferred_element_type=jnp.float32) * scale
        s = s - jnp.max(s, axis=-1, keepdims=True)                # f32 softmax
        p = jnp.exp(s)
        p = p * pl.reciprocal(jnp.sum(p, axis=-1, keepdims=True), approx=True)
        head_outs.append(
            jnp.einsum("bqk,bkd->bqd",
                       p.astype(mm_dtype), vh.astype(mm_dtype),
                       preferred_element_type=jnp.float32))       # (B, V, hd)
    attn = jnp.concatenate(head_outs, axis=-1).reshape(B * V, D)
    attn = mm(attn, wo_ref[0]) + bo_ref[0]

    x2 = _layernorm(x2 + attn, g1_ref[0], be1_ref[0])             # post-norm

    # --- feed-forward --------------------------------------------------------
    h1 = jnp.maximum(mm(x2, w1_ref[0]) + b1_ref[0], 0.0)
    h2 = mm(h1, w2_ref[0]) + b2_ref[0]
    x2 = _layernorm(x2 + h2, g2_ref[0], be2_ref[0])

    x3 = x2.reshape(B, V, D)
    x_scr[...] = x3

    # --- final layer: emit out[0] (first sequence element) ------------------
    @pl.when(layer == pl.num_programs(0) - 1)
    def _():
        o_ref[...] = x3[:, 0:1, :]                                # (B, 1, D)


# ---------------------------------------------------------------------------
# Wrapper: one pallas_call for the whole forward.
# ---------------------------------------------------------------------------
def transformer_aggregator_forward(views, params, nheads, mm_dtype=jnp.float32):
    V, B, C, H, W = views.shape
    assert H == 1 and W == 1, "module forward only type-checks for 1x1 views"
    D = params["lin_w_t"].shape[1]
    L = params["wqkv_t"].shape[0]
    FF = params["w1_t"].shape[2]
    assert D % nheads == 0, "d_model must be divisible by nheads"
    assert L >= 1

    # (V,B,C,1,1) -> batch-major rows (B*V, C): tiny raw-input permute so the
    # kernel activation is directly (B, V, D) (no activation transpose needed).
    x_in = views.reshape(V, B, C).transpose(1, 0, 2).reshape(B * V, C)

    kernel = functools.partial(_fused_kernel, nheads=nheads, mm_dtype=mm_dtype)

    def const_spec(r, c):                    # invariant across layers
        return pl.BlockSpec((r, c), lambda l: (0, 0))

    def layer_spec(r, c):                    # one layer's slice per grid step
        return pl.BlockSpec((1, r, c), lambda l: (l, 0, 0))

    in_specs = [
        const_spec(B * V, C),                # flattened views
        const_spec(C, D), const_spec(1, D),  # input Linear
        layer_spec(D, 3 * D), layer_spec(1, 3 * D),   # in_proj (QKV)
        layer_spec(D, D), layer_spec(1, D),           # out_proj
        layer_spec(D, FF), layer_spec(1, FF),         # ffn linear1
        layer_spec(FF, D), layer_spec(1, D),          # ffn linear2
        layer_spec(1, D), layer_spec(1, D),           # layernorm1 gamma/beta
        layer_spec(1, D), layer_spec(1, D),           # layernorm2 gamma/beta
    ]

    out = pl.pallas_call(
        kernel,
        out_shape=jax.ShapeDtypeStruct((B, 1, D), jnp.float32),
        grid=(L,),
        in_specs=in_specs,
        out_specs=pl.BlockSpec((B, 1, D), lambda l: (0, 0, 0)),
        scratch_shapes=[pltpu.VMEM((B, V, D), jnp.float32)],   # resident activation
        compiler_params=pltpu.CompilerParams(
            dimension_semantics=("arbitrary",)),   # layers are sequential
    )(x_in, params["lin_w_t"], params["lin_b"],
      params["wqkv_t"], params["bqkv"], params["wo_t"], params["bo"],
      params["w1_t"], params["b1"], params["w2_t"], params["b2"],
      params["g1"], params["be1"], params["g2"], params["be2"])
    return out[:, 0, :]                               # (B, d_model) == torch out[0]


# ---------------------------------------------------------------------------
# Parameters (deterministic synthetic init; per-layer weights stacked on L).
# ---------------------------------------------------------------------------
def init_params(key, view_channels, d_model, num_layers, dim_feedforward):
    def normal(k, shape, scale=0.05):
        return scale * jax.random.normal(k, shape, dtype=jnp.float32)

    keys = jax.random.split(key, 1 + num_layers)
    k0a, k0b = jax.random.split(keys[0])
    layers = []
    for l in range(num_layers):
        ks = jax.random.split(keys[1 + l], 8)
        layers.append(dict(
            wqkv_t=normal(ks[0], (d_model, 3 * d_model)),    # in_proj_weight^T
            bqkv=normal(ks[1], (1, 3 * d_model)),
            wo_t=normal(ks[2], (d_model, d_model)),           # out_proj.weight^T
            bo=normal(ks[3], (1, d_model)),
            w1_t=normal(ks[4], (d_model, dim_feedforward)),   # linear1.weight^T
            b1=normal(ks[5], (1, dim_feedforward)),
            w2_t=normal(ks[6], (dim_feedforward, d_model)),   # linear2.weight^T
            b2=normal(ks[7], (1, d_model)),
            g1=jnp.ones((1, d_model), jnp.float32),
            be1=jnp.zeros((1, d_model), jnp.float32),
            g2=jnp.ones((1, d_model), jnp.float32),
            be2=jnp.zeros((1, d_model), jnp.float32),
        ))
    stacked = {k: jnp.stack([lp[k] for lp in layers], axis=0) for k in layers[0]}
    return {"lin_w_t": normal(k0a, (view_channels, d_model)),
            "lin_b": normal(k0b, (1, d_model)),
            **stacked}


# ---------------------------------------------------------------------------
# Pure-JAX reference for the correctness check.
# ---------------------------------------------------------------------------
def reference_forward(views, params, nheads):
    V, B, C, _, _ = views.shape
    x = views.reshape(V * B, C) @ params["lin_w_t"] + params["lin_b"]
    D = x.shape[-1]
    hd = D // nheads
    x = x.reshape(V, B, D).transpose(1, 0, 2)                 # (B, V, D)
    L = params["wqkv_t"].shape[0]
    for l in range(L):
        qkv = x @ params["wqkv_t"][l] + params["bqkv"][l]
        q, k, v = qkv[..., :D], qkv[..., D:2 * D], qkv[..., 2 * D:]
        q = q.reshape(B, V, nheads, hd).transpose(0, 2, 1, 3)
        k = k.reshape(B, V, nheads, hd).transpose(0, 2, 1, 3)
        v = v.reshape(B, V, nheads, hd).transpose(0, 2, 1, 3)
        s = jnp.einsum("bhqd,bhkd->bhqk", q, k) / math.sqrt(hd)
        p = jax.nn.softmax(s, axis=-1)
        a = jnp.einsum("bhqk,bhkd->bhqd", p, v).transpose(0, 2, 1, 3).reshape(B, V, D)
        a = a @ params["wo_t"][l] + params["bo"][l]
        x = _layernorm(x + a, params["g1"][l], params["be1"][l])
        h1 = jnp.maximum(x @ params["w1_t"][l] + params["b1"][l], 0.0)
        h2 = h1 @ params["w2_t"][l] + params["b2"][l]
        x = _layernorm(x + h2, params["g2"][l], params["be2"][l])
    return x[:, 0, :]


if __name__ == "__main__":
    # Small shapes consistent with the module: V=seq, B=batch, C=view_channels.
    V, B, C = 8, 2, 4
    d_model, nheads, num_layers, dim_feedforward = 32, 4, 2, 64

    key = jax.random.PRNGKey(0)
    kx, kp = jax.random.split(key)
    views = jax.random.normal(kx, (V, B, C, 1, 1), dtype=jnp.float32)
    params = init_params(kp, C, d_model, num_layers, dim_feedforward)

    ref = reference_forward(views, params, nheads)

    # f32 MXU operands (reference-accurate path).
    out_f32 = jax.block_until_ready(
        transformer_aggregator_forward(views, params, nheads, mm_dtype=jnp.float32))
    np.testing.assert_allclose(np.asarray(out_f32), np.asarray(ref),
                               atol=2e-2, rtol=2e-2)

    # bf16 MXU operands (v6e/v7x fast path); softmax/LayerNorm/residual stay f32.
    out_bf16 = jax.block_until_ready(
        transformer_aggregator_forward(views, params, nheads, mm_dtype=jnp.bfloat16))
    np.testing.assert_allclose(np.asarray(out_bf16), np.asarray(ref),
                               atol=1e-1, rtol=1e-1)

    print("KERNEL_OK")
</pallas_src>

<mosaic_0001>
module attributes {stable_mosaic.version = 11 : i64} {
  func.func @_fused_kernel(%arg0: i32, %arg1: memref<16x4xf32, #tpu.memory_space<vmem>>, %arg2: memref<4x32xf32, #tpu.memory_space<vmem>>, %arg3: memref<1x32xf32, #tpu.memory_space<vmem>>, %arg4: memref<1x32x96xf32, #tpu.memory_space<vmem>>, %arg5: memref<1x1x96xf32, #tpu.memory_space<vmem>>, %arg6: memref<1x32x32xf32, #tpu.memory_space<vmem>>, %arg7: memref<1x1x32xf32, #tpu.memory_space<vmem>>, %arg8: memref<1x32x64xf32, #tpu.memory_space<vmem>>, %arg9: memref<1x1x64xf32, #tpu.memory_space<vmem>>, %arg10: memref<1x64x32xf32, #tpu.memory_space<vmem>>, %arg11: memref<1x1x32xf32, #tpu.memory_space<vmem>>, %arg12: memref<1x1x32xf32, #tpu.memory_space<vmem>>, %arg13: memref<1x1x32xf32, #tpu.memory_space<vmem>>, %arg14: memref<1x1x32xf32, #tpu.memory_space<vmem>>, %arg15: memref<1x1x32xf32, #tpu.memory_space<vmem>>, %arg16: memref<2x1x32xf32, #tpu.memory_space<vmem>>, %arg17: memref<2x8x32xf32, #tpu.memory_space<vmem>>) attributes {dimension_semantics = [#tpu.dimension_semantics<arbitrary>], iteration_bounds = array<i64: 2>, scalar_prefetch = 0 : i64, scratch_operands = 1 : i64, tpu.core_type = #tpu.core_type<tc>, window_params = [{pipeline_mode = #tpu.pipeline_mode<synchronous>, transform_indices = @transform_0, window_bounds = array<i64: 16, 4>}, {pipeline_mode = #tpu.pipeline_mode<synchronous>, transform_indices = @transform_1, window_bounds = array<i64: 4, 32>}, {pipeline_mode = #tpu.pipeline_mode<synchronous>, transform_indices = @transform_2, window_bounds = array<i64: 1, 32>}, {transform_indices = @transform_3, window_bounds = array<i64: 1, 32, 96>}, {transform_indices = @transform_4, window_bounds = array<i64: 1, 1, 96>}, {transform_indices = @transform_5, window_bounds = array<i64: 1, 32, 32>}, {transform_indices = @transform_6, window_bounds = array<i64: 1, 1, 32>}, {transform_indices = @transform_7, window_bounds = array<i64: 1, 32, 64>}, {transform_indices = @transform_8, window_bounds = array<i64: 1, 1, 64>}, {transform_indices = @transform_9, window_bounds = array<i64: 1, 64, 32>}, {transform_indices = @transform_10, window_bounds = array<i64: 1, 1, 32>}, {transform_indices = @transform_11, window_bounds = array<i64: 1, 1, 32>}, {transform_indices = @transform_12, window_bounds = array<i64: 1, 1, 32>}, {transform_indices = @transform_13, window_bounds = array<i64: 1, 1, 32>}, {transform_indices = @transform_14, window_bounds = array<i64: 1, 1, 32>}, {pipeline_mode = #tpu.pipeline_mode<synchronous>, transform_indices = @transform_15, window_bounds = array<i64: 2, 1, 32>}]} {
    %c0_i32 = arith.constant 0 : i32
    %0 = arith.cmpi eq, %arg0, %c0_i32 : i32
    %1 = arith.extui %0 : i1 to i32
    %c0_i32_0 = arith.constant 0 : i32
    %2 = arith.cmpi ne, %1, %c0_i32_0 : i32
    scf.if %2 {
      %c0_77 = arith.constant 0 : index
      %c0_78 = arith.constant 0 : index
      %161 = vector.load %arg1[%c0_77, %c0_78] : memref<16x4xf32, #tpu.memory_space<vmem>>, vector<16x4xf32>
      %c0_79 = arith.constant 0 : index
      %c0_80 = arith.constant 0 : index
      %162 = vector.load %arg2[%c0_79, %c0_80] : memref<4x32xf32, #tpu.memory_space<vmem>>, vector<4x32xf32>
      %cst_81 = arith.constant dense<0.000000e+00> : vector<16x32xf32>
      %163 = tpu.matmul %161, %162, %cst_81 {dimension_numbers = #tpu.dot_dimension_numbers<[1], [0], [0], [1], [0, 0, 1, 1], [], []>} : vector<16x4xf32>, vector<4x32xf32>, vector<16x32xf32> -> vector<16x32xf32>
      %c0_82 = arith.constant 0 : index
      %c0_83 = arith.constant 0 : index
      %164 = vector.load %arg3[%c0_82, %c0_83] : memref<1x32xf32, #tpu.memory_space<vmem>>, vector<1x32xf32>
      %165 = vector.broadcast %164 : vector<1x32xf32> to vector<16x32xf32>
      %166 = arith.addf %163, %165 : vector<16x32xf32>
      %167 = vector.shape_cast %166 : vector<16x32xf32> to vector<2x8x32xf32>
      %c0_84 = arith.constant 0 : index
      %c0_85 = arith.constant 0 : index
      %c0_86 = arith.constant 0 : index
      %168 = vector.load %arg17[%c0_84, %c0_85, %c0_86] : memref<2x8x32xf32, #tpu.memory_space<vmem>>, vector<2x8x32xf32>
      tpu.vector_store %arg17[%c0_84, %c0_85, %c0_86], %167 {strides = array<i32>} : memref<2x8x32xf32, #tpu.memory_space<vmem>>, vector<2x8x32xf32>,
    } else {
    }
    %c0 = arith.constant 0 : index
    %c0_1 = arith.constant 0 : index
    %c0_2 = arith.constant 0 : index
    %3 = vector.load %arg17[%c0, %c0_1, %c0_2] : memref<2x8x32xf32, #tpu.memory_space<vmem>>, vector<2x8x32xf32>
    %4 = vector.shape_cast %3 : vector<2x8x32xf32> to vector<16x32xf32>
    %c0_3 = arith.constant 0 : index
    %c0_4 = arith.constant 0 : index
    %c0_5 = arith.constant 0 : index
    %5 = vector.load %arg4[%c0_3, %c0_4, %c0_5] : memref<1x32x96xf32, #tpu.memory_space<vmem>>, vector<1x32x96xf32>
    %6 = vector.shape_cast %5 : vector<1x32x96xf32> to vector<32x96xf32>
    %cst = arith.constant dense<0.000000e+00> : vector<16x96xf32>
    %7 = tpu.matmul %4, %6, %cst {dimension_numbers = #tpu.dot_dimension_numbers<[1], [0], [0], [1], [0, 0, 1, 1], [], []>} : vector<16x32xf32>, vector<32x96xf32>, vector<16x96xf32> -> vector<16x96xf32>
    %c0_6 = arith.constant 0 : index
    %c0_7 = arith.constant 0 : index
    %c0_8 = arith.constant 0 : index
    %8 = vector.load %arg5[%c0_6, %c0_7, %c0_8] : memref<1x1x96xf32, #tpu.memory_space<vmem>>, vector<1x1x96xf32>
    %9 = vector.shape_cast %8 : vector<1x1x96xf32> to vector<1x96xf32>
    %10 = vector.broadcast %9 : vector<1x96xf32> to vector<16x96xf32>
    %11 = arith.addf %7, %10 : vector<16x96xf32>
    %12 = vector.shape_cast %11 : vector<16x96xf32> to vector<2x8x96xf32>
    %13 = vector.extract_strided_slice %12 {offsets = [0, 0, 0], sizes = [2, 8, 8], strides = [1, 1, 1]} : vector<2x8x96xf32> to vector<2x8x8xf32>
    %14 = vector.extract_strided_slice %12 {offsets = [0, 0, 32], sizes = [2, 8, 8], strides = [1, 1, 1]} : vector<2x8x96xf32> to vector<2x8x8xf32>
    %15 = vector.extract_strided_slice %12 {offsets = [0, 0, 64], sizes = [2, 8, 8], strides = [1, 1, 1]} : vector<2x8x96xf32> to vector<2x8x8xf32>
    "tpu.trace_start"() <{level = 10 : i32, message = "bqd,bkd->bqk"}> : () -> ()
    %cst_9 = arith.constant dense<0.000000e+00> : vector<2x8x8xf32>
    %16 = tpu.matmul %13, %14, %cst_9 {dimension_numbers = #tpu.dot_dimension_numbers<[2], [2], [1], [1], [0, 0, 0, 1, 1, 1], [0], [0]>} : vector<2x8x8xf32>, vector<2x8x8xf32>, vector<2x8x8xf32> -> vector<2x8x8xf32>
    "tpu.trace_stop"() : () -> ()
    %cst_10 = arith.constant 0.353553385 : f32
    %17 = vector.broadcast %cst_10 : f32 to vector<2x8x8xf32>
    %18 = arith.mulf %16, %17 : vector<2x8x8xf32>
    %cst_11 = arith.constant dense<0xFF800000> : vector<2x8xf32>
    %19 = vector.multi_reduction <maximumf>, %18, %cst_11 [2] : vector<2x8x8xf32> to vector<2x8xf32>
    %20 = vector.shape_cast %19 : vector<2x8xf32> to vector<2x8x1xf32>
    %21 = vector.broadcast %20 : vector<2x8x1xf32> to vector<2x8x8xf32>
    %22 = arith.subf %18, %21 : vector<2x8x8xf32>
    %23 = math.exp %22 : vector<2x8x8xf32>
    %cst_12 = arith.constant dense<0.000000e+00> : vector<2x8xf32>
    %24 = vector.multi_reduction <add>, %23, %cst_12 [2] : vector<2x8x8xf32> to vector<2x8xf32>
    %25 = vector.shape_cast %24 : vector<2x8xf32> to vector<2x8x1xf32>
    %26 = tpu.reciprocal %25 {approx = true} : vector<2x8x1xf32> -> vector<2x8x1xf32>
    %27 = vector.broadcast %26 : vector<2x8x1xf32> to vector<2x8x8xf32>
    %28 = arith.mulf %23, %27 : vector<2x8x8xf32>
    "tpu.trace_start"() <{level = 10 : i32, message = "bqk,bkd->bqd"}> : () -> ()
    %cst_13 = arith.constant dense<0.000000e+00> : vector<2x8x8xf32>
    %29 = tpu.matmul %28, %15, %cst_13 {dimension_numbers = #tpu.dot_dimension_numbers<[2], [1], [1], [2], [0, 0, 0, 1, 1, 2], [0], [0]>} : vector<2x8x8xf32>, vector<2x8x8xf32>, vector<2x8x8xf32> -> vector<2x8x8xf32>
    "tpu.trace_stop"() : () -> ()
    %30 = vector.extract_strided_slice %12 {offsets = [0, 0, 8], sizes = [2, 8, 8], strides = [1, 1, 1]} : vector<2x8x96xf32> to vector<2x8x8xf32>
    %31 = vector.extract_strided_slice %12 {offsets = [0, 0, 40], sizes = [2, 8, 8], strides = [1, 1, 1]} : vector<2x8x96xf32> to vector<2x8x8xf32>
    %32 = vector.extract_strided_slice %12 {offsets = [0, 0, 72], sizes = [2, 8, 8], strides = [1, 1, 1]} : vector<2x8x96xf32> to vector<2x8x8xf32>
    "tpu.trace_start"() <{level = 10 : i32, message = "bqd,bkd->bqk"}> : () -> ()
    %cst_14 = arith.constant dense<0.000000e+00> : vector<2x8x8xf32>
    %33 = tpu.matmul %30, %31, %cst_14 {dimension_numbers = #tpu.dot_dimension_numbers<[2], [2], [1], [1], [0, 0, 0, 1, 1, 1], [0], [0]>} : vector<2x8x8xf32>, vector<2x8x8xf32>, vector<2x8x8xf32> -> vector<2x8x8xf32>
    "tpu.trace_stop"() : () -> ()
    %cst_15 = arith.constant 0.353553385 : f32
    %34 = vector.broadcast %cst_15 : f32 to vector<2x8x8xf32>
    %35 = arith.mulf %33, %34 : vector<2x8x8xf32>
    %cst_16 = arith.constant dense<0xFF800000> : vector<2x8xf32>
    %36 = vector.multi_reduction <maximumf>, %35, %cst_16 [2] : vector<2x8x8xf32> to vector<2x8xf32>
    %37 = vector.shape_cast %36 : vector<2x8xf32> to vector<2x8x1xf32>
    %38 = vector.broadcast %37 : vector<2x8x1xf32> to vector<2x8x8xf32>
    %39 = arith.subf %35, %38 : vector<2x8x8xf32>
    %40 = math.exp %39 : vector<2x8x8xf32>
    %cst_17 = arith.constant dense<0.000000e+00> : vector<2x8xf32>
    %41 = vector.multi_reduction <add>, %40, %cst_17 [2] : vector<2x8x8xf32> to vector<2x8xf32>
    %42 = vector.shape_cast %41 : vector<2x8xf32> to vector<2x8x1xf32>
    %43 = tpu.reciprocal %42 {approx = true} : vector<2x8x1xf32> -> vector<2x8x1xf32>
    %44 = vector.broadcast %43 : vector<2x8x1xf32> to vector<2x8x8xf32>
    %45 = arith.mulf %40, %44 : vector<2x8x8xf32>
    "tpu.trace_start"() <{level = 10 : i32, message = "bqk,bkd->bqd"}> : () -> ()
    %cst_18 = arith.constant dense<0.000000e+00> : vector<2x8x8xf32>
    %46 = tpu.matmul %45, %32, %cst_18 {dimension_numbers = #tpu.dot_dimension_numbers<[2], [1], [1], [2], [0, 0, 0, 1, 1, 2], [0], [0]>} : vector<2x8x8xf32>, vector<2x8x8xf32>, vector<2x8x8xf32> -> vector<2x8x8xf32>
    "tpu.trace_stop"() : () -> ()
    %47 = vector.extract_strided_slice %12 {offsets = [0, 0, 16], sizes = [2, 8, 8], strides = [1, 1, 1]} : vector<2x8x96xf32> to vector<2x8x8xf32>
    %48 = vector.extract_strided_slice %12 {offsets = [0, 0, 48], sizes = [2, 8, 8], strides = [1, 1, 1]} : vector<2x8x96xf32> to vector<2x8x8xf32>
    %49 = vector.extract_strided_slice %12 {offsets = [0, 0, 80], sizes = [2, 8, 8], strides = [1, 1, 1]} : vector<2x8x96xf32> to vector<2x8x8xf32>
    "tpu.trace_start"() <{level = 10 : i32, message = "bqd,bkd->bqk"}> : () -> ()
    %cst_19 = arith.constant dense<0.000000e+00> : vector<2x8x8xf32>
    %50 = tpu.matmul %47, %48, %cst_19 {dimension_numbers = #tpu.dot_dimension_numbers<[2], [2], [1], [1], [0, 0, 0, 1, 1, 1], [0], [0]>} : vector<2x8x8xf32>, vector<2x8x8xf32>, vector<2x8x8xf32> -> vector<2x8x8xf32>
    "tpu.trace_stop"() : () -> ()
    %cst_20 = arith.constant 0.353553385 : f32
    %51 = vector.broadcast %cst_20 : f32 to vector<2x8x8xf32>
    %52 = arith.mulf %50, %51 : vector<2x8x8xf32>
    %cst_21 = arith.constant dense<0xFF800000> : vector<2x8xf32>
    %53 = vector.multi_reduction <maximumf>, %52, %cst_21 [2] : vector<2x8x8xf32> to vector<2x8xf32>
    %54 = vector.shape_cast %53 : vector<2x8xf32> to vector<2x8x1xf32>
    %55 = vector.broadcast %54 : vector<2x8x1xf32> to vector<2x8x8xf32>
    %56 = arith.subf %52, %55 : vector<2x8x8xf32>
    %57 = math.exp %56 : vector<2x8x8xf32>
    %cst_22 = arith.constant dense<0.000000e+00> : vector<2x8xf32>
    %58 = vector.multi_reduction <add>, %57, %cst_22 [2] : vector<2x8x8xf32> to vector<2x8xf32>
    %59 = vector.shape_cast %58 : vector<2x8xf32> to vector<2x8x1xf32>
    %60 = tpu.reciprocal %59 {approx = true} : vector<2x8x1xf32> -> vector<2x8x1xf32>
    %61 = vector.broadcast %60 : vector<2x8x1xf32> to vector<2x8x8xf32>
    %62 = arith.mulf %57, %61 : vector<2x8x8xf32>
    "tpu.trace_start"() <{level = 10 : i32, message = "bqk,bkd->bqd"}> : () -> ()
    %cst_23 = arith.constant dense<0.000000e+00> : vector<2x8x8xf32>
    %63 = tpu.matmul %62, %49, %cst_23 {dimension_numbers = #tpu.dot_dimension_numbers<[2], [1], [1], [2], [0, 0, 0, 1, 1, 2], [0], [0]>} : vector<2x8x8xf32>, vector<2x8x8xf32>, vector<2x8x8xf32> -> vector<2x8x8xf32>
    "tpu.trace_stop"() : () -> ()
    %64 = vector.extract_strided_slice %12 {offsets = [0, 0, 24], sizes = [2, 8, 8], strides = [1, 1, 1]} : vector<2x8x96xf32> to vector<2x8x8xf32>
    %65 = vector.extract_strided_slice %12 {offsets = [0, 0, 56], sizes = [2, 8, 8], strides = [1, 1, 1]} : vector<2x8x96xf32> to vector<2x8x8xf32>
    %66 = vector.extract_strided_slice %12 {offsets = [0, 0, 88], sizes = [2, 8, 8], strides = [1, 1, 1]} : vector<2x8x96xf32> to vector<2x8x8xf32>
    "tpu.trace_start"() <{level = 10 : i32, message = "bqd,bkd->bqk"}> : () -> ()
    %cst_24 = arith.constant dense<0.000000e+00> : vector<2x8x8xf32>
    %67 = tpu.matmul %64, %65, %cst_24 {dimension_numbers = #tpu.dot_dimension_numbers<[2], [2], [1], [1], [0, 0, 0, 1, 1, 1], [0], [0]>} : vector<2x8x8xf32>, vector<2x8x8xf32>, vector<2x8x8xf32> -> vector<2x8x8xf32>
    "tpu.trace_stop"() : () -> ()
    %cst_25 = arith.constant 0.353553385 : f32
    %68 = vector.broadcast %cst_25 : f32 to vector<2x8x8xf32>
    %69 = arith.mulf %67, %68 : vector<2x8x8xf32>
    %cst_26 = arith.constant dense<0xFF800000> : vector<2x8xf32>
    %70 = vector.multi_reduction <maximumf>, %69, %cst_26 [2] : vector<2x8x8xf32> to vector<2x8xf32>
    %71 = vector.shape_cast %70 : vector<2x8xf32> to vector<2x8x1xf32>
    %72 = vector.broadcast %71 : vector<2x8x1xf32> to vector<2x8x8xf32>
    %73 = arith.subf %69, %72 : vector<2x8x8xf32>
    %74 = math.exp %73 : vector<2x8x8xf32>
    %cst_27 = arith.constant dense<0.000000e+00> : vector<2x8xf32>
    %75 = vector.multi_reduction <add>, %74, %cst_27 [2] : vector<2x8x8xf32> to vector<2x8xf32>
    %76 = vector.shape_cast %75 : vector<2x8xf32> to vector<2x8x1xf32>
    %77 = tpu.reciprocal %76 {approx = true} : vector<2x8x1xf32> -> vector<2x8x1xf32>
    %78 = vector.broadcast %77 : vector<2x8x1xf32> to vector<2x8x8xf32>
    %79 = arith.mulf %74, %78 : vector<2x8x8xf32>
    "tpu.trace_start"() <{level = 10 : i32, message = "bqk,bkd->bqd"}> : () -> ()
    %cst_28 = arith.constant dense<0.000000e+00> : vector<2x8x8xf32>
    %80 = tpu.matmul %79, %66, %cst_28 {dimension_numbers = #tpu.dot_dimension_numbers<[2], [1], [1], [2], [0, 0, 0, 1, 1, 2], [0], [0]>} : vector<2x8x8xf32>, vector<2x8x8xf32>, vector<2x8x8xf32> -> vector<2x8x8xf32>
    "tpu.trace_stop"() : () -> ()
    %81 = tpu.concatenate %29, %46, %63, %80 in 2 : vector<2x8x8xf32>, vector<2x8x8xf32>, vector<2x8x8xf32>, vector<2x8x8xf32> -> vector<2x8x32xf32>
    %82 = vector.shape_cast %81 : vector<2x8x32xf32> to vector<16x32xf32>
    %c0_29 = arith.constant 0 : index
    %c0_30 = arith.constant 0 : index
    %c0_31 = arith.constant 0 : index
    %83 = vector.load %arg6[%c0_29, %c0_30, %c0_31] : memref<1x32x32xf32, #tpu.memory_space<vmem>>, vector<1x32x32xf32>
    %84 = vector.shape_cast %83 : vector<1x32x32xf32> to vector<32x32xf32>
    %cst_32 = arith.constant dense<0.000000e+00> : vector<16x32xf32>
    %85 = tpu.matmul %82, %84, %cst_32 {dimension_numbers = #tpu.dot_dimension_numbers<[1], [0], [0], [1], [0, 0, 1, 1], [], []>} : vector<16x32xf32>, vector<32x32xf32>, vector<16x32xf32> -> vector<16x32xf32>
    %c0_33 = arith.constant 0 : index
    %c0_34 = arith.constant 0 : index
    %c0_35 = arith.constant 0 : index
    %86 = vector.load %arg7[%c0_33, %c0_34, %c0_35] : memref<1x1x32xf32, #tpu.memory_space<vmem>>, vector<1x1x32xf32>
    %87 = vector.shape_cast %86 : vector<1x1x32xf32> to vector<1x32xf32>
    %88 = vector.broadcast %87 : vector<1x32xf32> to vector<16x32xf32>
    %89 = arith.addf %85, %88 : vector<16x32xf32>
    %90 = arith.addf %4, %89 : vector<16x32xf32>
    %c0_36 = arith.constant 0 : index
    %c0_37 = arith.constant 0 : index
    %c0_38 = arith.constant 0 : index
    %91 = vector.load %arg12[%c0_36, %c0_37, %c0_38] : memref<1x1x32xf32, #tpu.memory_space<vmem>>, vector<1x1x32xf32>
    %92 = vector.shape_cast %91 : vector<1x1x32xf32> to vector<1x32xf32>
    %c0_39 = arith.constant 0 : index
    %c0_40 = arith.constant 0 : index
    %c0_41 = arith.constant 0 : index
    %93 = vector.load %arg13[%c0_39, %c0_40, %c0_41] : memref<1x1x32xf32, #tpu.memory_space<vmem>>, vector<1x1x32xf32>
    %94 = vector.shape_cast %93 : vector<1x1x32xf32> to vector<1x32xf32>
    %cst_42 = arith.constant dense<0.000000e+00> : vector<16xf32>
    %95 = vector.multi_reduction <add>, %90, %cst_42 [1] : vector<16x32xf32> to vector<16xf32>
    %96 = vector.shape_cast %95 : vector<16xf32> to vector<16x1xf32>
    %cst_43 = arith.constant 3.200000e+01 : f32
    %97 = vector.broadcast %cst_43 : f32 to vector<16x1xf32>
    %98 = arith.divf %96, %97 : vector<16x1xf32>
    %99 = vector.broadcast %98 : vector<16x1xf32> to vector<16x32xf32>
    %100 = arith.subf %90, %99 : vector<16x32xf32>
    %101 = arith.mulf %100, %100 : vector<16x32xf32>
    %cst_44 = arith.constant dense<0.000000e+00> : vector<16xf32>
    %102 = vector.multi_reduction <add>, %101, %cst_44 [1] : vector<16x32xf32> to vector<16xf32>
    %103 = vector.shape_cast %102 : vector<16xf32> to vector<16x1xf32>
    %cst_45 = arith.constant 3.200000e+01 : f32
    %104 = vector.broadcast %cst_45 : f32 to vector<16x1xf32>
    %105 = arith.divf %103, %104 : vector<16x1xf32>
    %cst_46 = arith.constant 9.99999974E-6 : f32
    %106 = vector.broadcast %cst_46 : f32 to vector<16x1xf32>
    %107 = arith.addf %105, %106 : vector<16x1xf32>
    %108 = math.rsqrt %107 : vector<16x1xf32>
    %109 = vector.broadcast %108 : vector<16x1xf32> to vector<16x32xf32>
    %110 = arith.mulf %100, %109 : vector<16x32xf32>
    %111 = vector.broadcast %92 : vector<1x32xf32> to vector<16x32xf32>
    %112 = arith.mulf %110, %111 : vector<16x32xf32>
    %113 = vector.broadcast %94 : vector<1x32xf32> to vector<16x32xf32>
    %114 = arith.addf %112, %113 : vector<16x32xf32>
    %c0_47 = arith.constant 0 : index
    %c0_48 = arith.constant 0 : index
    %c0_49 = arith.constant 0 : index
    %115 = vector.load %arg8[%c0_47, %c0_48, %c0_49] : memref<1x32x64xf32, #tpu.memory_space<vmem>>, vector<1x32x64xf32>
    %116 = vector.shape_cast %115 : vector<1x32x64xf32> to vector<32x64xf32>
    %cst_50 = arith.constant dense<0.000000e+00> : vector<16x64xf32>
    %117 = tpu.matmul %114, %116, %cst_50 {dimension_numbers = #tpu.dot_dimension_numbers<[1], [0], [0], [1], [0, 0, 1, 1], [], []>} : vector<16x32xf32>, vector<32x64xf32>, vector<16x64xf32> -> vector<16x64xf32>
    %c0_51 = arith.constant 0 : index
    %c0_52 = arith.constant 0 : index
    %c0_53 = arith.constant 0 : index
    %118 = vector.load %arg9[%c0_51, %c0_52, %c0_53] : memref<1x1x64xf32, #tpu.memory_space<vmem>>, vector<1x1x64xf32>
    %119 = vector.shape_cast %118 : vector<1x1x64xf32> to vector<1x64xf32>
    %120 = vector.broadcast %119 : vector<1x64xf32> to vector<16x64xf32>
    %121 = arith.addf %117, %120 : vector<16x64xf32>
    %cst_54 = arith.constant 0.000000e+00 : f32
    %122 = vector.broadcast %cst_54 : f32 to vector<16x64xf32>
    %123 = arith.maximumf %121, %122 : vector<16x64xf32>
    %c0_55 = arith.constant 0 : index
    %c0_56 = arith.constant 0 : index
    %c0_57 = arith.constant 0 : index
    %124 = vector.load %arg10[%c0_55, %c0_56, %c0_57] : memref<1x64x32xf32, #tpu.memory_space<vmem>>, vector<1x64x32xf32>
    %125 = vector.shape_cast %124 : vector<1x64x32xf32> to vector<64x32xf32>
    %cst_58 = arith.constant dense<0.000000e+00> : vector<16x32xf32>
    %126 = tpu.matmul %123, %125, %cst_58 {dimension_numbers = #tpu.dot_dimension_numbers<[1], [0], [0], [1], [0, 0, 1, 1], [], []>} : vector<16x64xf32>, vector<64x32xf32>, vector<16x32xf32> -> vector<16x32xf32>
    %c0_59 = arith.constant 0 : index
    %c0_60 = arith.constant 0 : index
    %c0_61 = arith.constant 0 : index
    %127 = vector.load %arg11[%c0_59, %c0_60, %c0_61] : memref<1x1x32xf32, #tpu.memory_space<vmem>>, vector<1x1x32xf32>
    %128 = vector.shape_cast %127 : vector<1x1x32xf32> to vector<1x32xf32>
    %129 = vector.broadcast %128 : vector<1x32xf32> to vector<16x32xf32>
    %130 = arith.addf %126, %129 : vector<16x32xf32>
    %131 = arith.addf %114, %130 : vector<16x32xf32>
    %c0_62 = arith.constant 0 : index
    %c0_63 = arith.constant 0 : index
    %c0_64 = arith.constant 0 : index
    %132 = vector.load %arg14[%c0_62, %c0_63, %c0_64] : memref<1x1x32xf32, #tpu.memory_space<vmem>>, vector<1x1x32xf32>
    %133 = vector.shape_cast %132 : vector<1x1x32xf32> to vector<1x32xf32>
    %c0_65 = arith.constant 0 : index
    %c0_66 = arith.constant 0 : index
    %c0_67 = arith.constant 0 : index
    %134 = vector.load %arg15[%c0_65, %c0_66, %c0_67] : memref<1x1x32xf32, #tpu.memory_space<vmem>>, vector<1x1x32xf32>
    %135 = vector.shape_cast %134 : vector<1x1x32xf32> to vector<1x32xf32>
    %cst_68 = arith.constant dense<0.000000e+00> : vector<16xf32>
    %136 = vector.multi_reduction <add>, %131, %cst_68 [1] : vector<16x32xf32> to vector<16xf32>
    %137 = vector.shape_cast %136 : vector<16xf32> to vector<16x1xf32>
    %cst_69 = arith.constant 3.200000e+01 : f32
    %138 = vector.broadcast %cst_69 : f32 to vector<16x1xf32>
    %139 = arith.divf %137, %138 : vector<16x1xf32>
    %140 = vector.broadcast %139 : vector<16x1xf32> to vector<16x32xf32>
    %141 = arith.subf %131, %140 : vector<16x32xf32>
    %142 = arith.mulf %141, %141 : vector<16x32xf32>
    %cst_70 = arith.constant dense<0.000000e+00> : vector<16xf32>
    %143 = vector.multi_reduction <add>, %142, %cst_70 [1] : vector<16x32xf32> to vector<16xf32>
    %144 = vector.shape_cast %143 : vector<16xf32> to vector<16x1xf32>
    %cst_71 = arith.constant 3.200000e+01 : f32
    %145 = vector.broadcast %cst_71 : f32 to vector<16x1xf32>
    %146 = arith.divf %144, %145 : vector<16x1xf32>
    %cst_72 = arith.constant 9.99999974E-6 : f32
    %147 = vector.broadcast %cst_72 : f32 to vector<16x1xf32>
    %148 = arith.addf %146, %147 : vector<16x1xf32>
    %149 = math.rsqrt %148 : vector<16x1xf32>
    %150 = vector.broadcast %149 : vector<16x1xf32> to vector<16x32xf32>
    %151 = arith.mulf %141, %150 : vector<16x32xf32>
    %152 = vector.broadcast %133 : vector<1x32xf32> to vector<16x32xf32>
    %153 = arith.mulf %151, %152 : vector<16x32xf32>
    %154 = vector.broadcast %135 : vector<1x32xf32> to vector<16x32xf32>
    %155 = arith.addf %153, %154 : vector<16x32xf32>
    %156 = vector.shape_cast %155 : vector<16x32xf32> to vector<2x8x32xf32>
    %c0_73 = arith.constant 0 : index
    %c0_74 = arith.constant 0 : index
    %c0_75 = arith.constant 0 : index
    %157 = vector.load %arg17[%c0_73, %c0_74, %c0_75] : memref<2x8x32xf32, #tpu.memory_space<vmem>>, vector<2x8x32xf32>
    tpu.vector_store %arg17[%c0_73, %c0_74, %c0_75], %156 {strides = array<i32>} : memref<2x8x32xf32, #tpu.memory_space<vmem>>, vector<2x8x32xf32>,
    %c1_i32 = arith.constant 1 : i32
    %158 = arith.cmpi eq, %arg0, %c1_i32 : i32
    %159 = arith.extui %158 : i1 to i32
    %c0_i32_76 = arith.constant 0 : i32
    %160 = arith.cmpi ne, %159, %c0_i32_76 : i32
    scf.if %160 {
      %161 = vector.extract_strided_slice %156 {offsets = [0, 0, 0], sizes = [2, 1, 32], strides = [1, 1, 1]} : vector<2x8x32xf32> to vector<2x1x32xf32>
      %c0_77 = arith.constant 0 : index
      %c0_78 = arith.constant 0 : index
      %c0_79 = arith.constant 0 : index
      %162 = vector.load %arg16[%c0_77, %c0_78, %c0_79] : memref<2x1x32xf32, #tpu.memory_space<vmem>>, vector<2x1x32xf32>
      tpu.vector_store %arg16[%c0_77, %c0_78, %c0_79], %161 {strides = array<i32>} : memref<2x1x32xf32, #tpu.memory_space<vmem>>, vector<2x1x32xf32>,
    } else {
    }
    return
  }
  func.func @transform_0(%arg0: i32) -> (i32, i32) {
    %c0_i32 = arith.constant 0 : i32
    %c0_i32_0 = arith.constant 0 : i32
    %c0_i32_1 = arith.constant 0 : i32
    return %c0_i32, %c0_i32_0 : i32, i32
  }
  func.func @transform_1(%arg0: i32) -> (i32, i32) {
    %c0_i32 = arith.constant 0 : i32
    %c0_i32_0 = arith.constant 0 : i32
    %c0_i32_1 = arith.constant 0 : i32
    return %c0_i32, %c0_i32_0 : i32, i32
  }
  func.func @transform_2(%arg0: i32) -> (i32, i32) {
    %c0_i32 = arith.constant 0 : i32
    %c0_i32_0 = arith.constant 0 : i32
    %c0_i32_1 = arith.constant 0 : i32
    return %c0_i32, %c0_i32_0 : i32, i32
  }
  func.func @transform_3(%arg0: i32) -> (i32, i32, i32) {
    %c0_i32 = arith.constant 0 : i32
    %c0_i32_0 = arith.constant 0 : i32
    %c0_i32_1 = arith.constant 0 : i32
    return %arg0, %c0_i32, %c0_i32_0 : i32, i32, i32
  }
  func.func @transform_4(%arg0: i32) -> (i32, i32, i32) {
    %c0_i32 = arith.constant 0 : i32
    %c0_i32_0 = arith.constant 0 : i32
    %c0_i32_1 = arith.constant 0 : i32
    return %arg0, %c0_i32, %c0_i32_0 : i32, i32, i32
  }
  func.func @transform_5(%arg0: i32) -> (i32, i32, i32) {
    %c0_i32 = arith.constant 0 : i32
    %c0_i32_0 = arith.constant 0 : i32
    %c0_i32_1 = arith.constant 0 : i32
    return %arg0, %c0_i32, %c0_i32_0 : i32, i32, i32
  }
  func.func @transform_6(%arg0: i32) -> (i32, i32, i32) {
    %c0_i32 = arith.constant 0 : i32
    %c0_i32_0 = arith.constant 0 : i32
    %c0_i32_1 = arith.constant 0 : i32
    return %arg0, %c0_i32, %c0_i32_0 : i32, i32, i32
  }
  func.func @transform_7(%arg0: i32) -> (i32, i32, i32) {
    %c0_i32 = arith.constant 0 : i32
    %c0_i32_0 = arith.constant 0 : i32
    %c0_i32_1 = arith.constant 0 : i32
    return %arg0, %c0_i32, %c0_i32_0 : i32, i32, i32
  }
  func.func @transform_8(%arg0: i32) -> (i32, i32, i32) {
    %c0_i32 = arith.constant 0 : i32
    %c0_i32_0 = arith.constant 0 : i32
    %c0_i32_1 = arith.constant 0 : i32
    return %arg0, %c0_i32, %c0_i32_0 : i32, i32, i32
  }
  func.func @transform_9(%arg0: i32) -> (i32, i32, i32) {
    %c0_i32 = arith.constant 0 : i32
    %c0_i32_0 = arith.constant 0 : i32
    %c0_i32_1 = arith.constant 0 : i32
    return %arg0, %c0_i32, %c0_i32_0 : i32, i32, i32
  }
  func.func @transform_10(%arg0: i32) -> (i32, i32, i32) {
    %c0_i32 = arith.constant 0 : i32
    %c0_i32_0 = arith.constant 0 : i32
    %c0_i32_1 = arith.constant 0 : i32
    return %arg0, %c0_i32, %c0_i32_0 : i32, i32, i32
  }
  func.func @transform_11(%arg0: i32) -> (i32, i32, i32) {
    %c0_i32 = arith.constant 0 : i32
    %c0_i32_0 = arith.constant 0 : i32
    %c0_i32_1 = arith.constant 0 : i32
    return %arg0, %c0_i32, %c0_i32_0 : i32, i32, i32
  }
  func.func @transform_12(%arg0: i32) -> (i32, i32, i32) {
    %c0_i32 = arith.constant 0 : i32
    %c0_i32_0 = arith.constant 0 : i32
    %c0_i32_1 = arith.constant 0 : i32
    return %arg0, %c0_i32, %c0_i32_0 : i32, i32, i32
  }
  func.func @transform_13(%arg0: i32) -> (i32, i32, i32) {
    %c0_i32 = arith.constant 0 : i32
    %c0_i32_0 = arith.constant 0 : i32
    %c0_i32_1 = arith.constant 0 : i32
    return %arg0, %c0_i32, %c0_i32_0 : i32, i32, i32
  }
  func.func @transform_14(%arg0: i32) -> (i32, i32, i32) {
    %c0_i32 = arith.constant 0 : i32
    %c0_i32_0 = arith.constant 0 : i32
    %c0_i32_1 = arith.constant 0 : i32
    return %arg0, %c0_i32, %c0_i32_0 : i32, i32, i32
  }
  func.func @transform_15(%arg0: i32) -> (i32, i32, i32) {
    %c0_i32 = arith.constant 0 : i32
    %c0_i32_0 = arith.constant 0 : i32
    %c0_i32_1 = arith.constant 0 : i32
    %c0_i32_2 = arith.constant 0 : i32
    return %c0_i32, %c0_i32_0, %c0_i32_1 : i32, i32, i32
  }
}

</mosaic_0001>

<bundles_post_ra>
// kernel: tpu_custom_call.1
= control target key start
LH: loop header
LB: loop body
LE: loop exit
PB: predicated region body
PF: predicated region fallthrough
CT: control target
= control target key end

     0   :  { %s2344_s0 = inlined_call_operand.vmem [shape: f32[16,4], index: 0, kind: input, shape index: {}]   ;;  %s2345_s1 = inlined_call_operand.vmem [shape: f32[4,32], index: 1, kind: input, shape index: {}]   ;;  %s2346_s2 = inlined_call_operand.hbm [shape: f32[1,32], index: 2, kind: input, shape index: {}]   ;;  %s2347_s3 = inlined_call_operand.vmem [shape: f32[2,32,96], index: 3, kind: input, shape index: {}]   ;;  %s2348_s4 = inlined_call_operand.vmem [shape: f32[2,1,96], index: 4, kind: input, shape index: {}]   ;;  %s2349_s5 = inlined_call_operand.vmem [shape: f32[2,32,32], index: 5, kind: input, shape index: {}]   ;;  %s2350_s6 = inlined_call_operand.vmem [shape: f32[2,1,32], index: 6, kind: input, shape index: {}]   ;;  %s2351_s7 = inlined_call_operand.vmem [shape: f32[2,32,64], index: 7, kind: input, shape index: {}]   ;;  %s2352_s8 = inlined_call_operand.vmem [shape: f32[2,1,64], index: 8, kind: input, shape index: {}]   ;;  %s2353_s9 = inlined_call_operand.vmem [shape: f32[2,64,32], index: 9, kind: input, shape index: {}]   ;;  %s2354_s10 = inlined_call_operand.vmem [shape: f32[2,1,32], index: 10, kind: input, shape index: {}]   ;;  %s2355_s11 = inlined_call_operand.vmem [shape: f32[2,1,32], index: 11, kind: input, shape index: {}]   ;;  %s2356_s12 = inlined_call_operand.vmem [shape: f32[2,1,32], index: 12, kind: input, shape index: {}]   ;;  %s2357_s13 = inlined_call_operand.vmem [shape: f32[2,1,32], index: 13, kind: input, shape index: {}]   ;;  %s2358_s14 = inlined_call_operand.vmem [shape: f32[2,1,32], index: 14, kind: input, shape index: {}]   ;;  %s2359_s15 = inlined_call_operand.hbm [shape: f32[2,1,32], index: 15, kind: output, shape index: {}]  }
   0x1   :  { %2362 = sst [smem:[#allocation10_spill]] %s2344_s0 }
   0x2   :  { %2363 = sst [smem:[#allocation11_spill]] %s2346_s2 }
   0x3   :  { %2364 = sst [smem:[#allocation12_spill]] %s2347_s3 }
   0x4   :  { %2365 = sst [smem:[#allocation13_spill]] %s2349_s5 }
   0x5   :  { %2366 = sst [smem:[#allocation14_spill]] %s2351_s7 }
   0x6   :  { %2367 = sst [smem:[#allocation15_spill]] %s2352_s8 }
   0x7   :  { %2368 = sst [smem:[#allocation16_spill]] %s2359_s15 }
   0x8   :  { %20 = vsyncpa [#allocation4], 0 }
   0x9   :  { %21 = vsyncpa [#allocation5], 0  ;;  %s2065_s18 = smov 0  }
   0xa LB: > { %2369 = sst [smem:[#allocation9_spill]] %s1965_s18  ;;  %s2071_s19 = sadd.s32 4294967295, %s1965_s18   ;;  %s1965_s18 = sphi %s2065_s18, %s27_s18  }
   0xb   : > { %p1736_p0 = scmp.ge.s32.totalorder %s1965_s18, 1  ;;  %p428_p1 = scmp.lt.s32.totalorder %s1965_s18, 3 }
   0xc   : > { %p1737_p2 = scmp.ne.s32.totalorder %s2071_s19, 0  ;;  %s2370_s2 = sld [smem:[#allocation11_spill]] }
   0xd   : > { %p429_p3 = pnand %p1736_p0, %p428_p1  ;;  %p1807_p4 = scmp.eq.s32.totalorder %s2071_s19, 0 }
   0xe   : > { %s1967_s23 = smov [#allocation3]  }
   0xf   : > { %s448_s24 = sshll.u32 %s1967_s23, 4  ;;  %p1803_p5 = pneg %p429_p3  ;;  %s449_s24 = int_to_ptr.vmem [resolvable:$true] %s448_s24 }
  0x10   : > { %541 = sbr.rel (%p429_p3) target bundleno = 2430 (0x97e), region = 80 }
  0x11   : > { %p1804_p6 = pnand %p1807_p4, %p1803_p5 }
  0x12   : > { %s446_s22 = sshll.u32 %s2370_s2, 4  ;;  %s447_s22 = int_to_ptr.hbm [resolvable:$true] %s446_s22 }
  0x13   : > { %1806 = dma.hbm_to_vmem [thread:$0]  (!%p1804_p6), %s447_s22, 16, %s449_s24, [#allocation4]  }
  0x15   : > { %1956 = dma.done.wait (%p1807_p4), [#allocation4], 16  }
  0x16   : > { %1958 = vsyncadd (%p1807_p4), [#allocation4], 4294967280  ;;  %p624_p7 = scmp.lt.s32.totalorder %s2071_s19, 1  ;;  %s2371_s3 = sld [smem:[#allocation12_spill]] }
  0x17   : > { %s2372_s5 = sld [smem:[#allocation13_spill]] }
  0x18   : > { %s2082_s25 = scalar_select %p624_p7, %s2071_s19, 1 }
  0x19   : > { %s2373_s7 = sld [smem:[#allocation14_spill]] }
  0x1a   : > { %s1790_s26 = sshll.u32 %s2082_s25, 5  ;;  %s1793_s16 = sshll.u32 %s2082_s25, 6 }
  0x1b   : > { %s2116_s20 = scalar_lea.vmem %s2353_s9, %s1793_s16  ;;  %s655_s23 = scalar_lea.vmem %s2354_s10, %s2082_s25 }
  0x1c   : > { %s2092_s17 = scalar_lea.vmem %s2371_s3, %s1790_s26  ;;  %s658_s15 = scalar_lea.vmem %s2355_s11, %s2082_s25 }
  0x1d   : > { %s2097_s22 = scalar_lea.vmem %s2372_s5, %s1790_s26  ;;  %s664_s30 = scalar_lea.vmem %s2357_s13, %s2082_s25 }
  0x1e   : > { %s667_s29 = scalar_lea.vmem %s2358_s14, %s2082_s25  ;;  %671 = sbr.rel (%p1737_p2) target bundleno = 169 (0xa9), region = 88 }
  0x1f   : > { %s2106_s0 = scalar_lea.vmem %s2373_s7, %s1790_s26  ;;  %s661_s7 = scalar_lea.vmem %s2356_s12, %s2082_s25 }
  0x20   : > { %s2375_s24 = sld [smem:[#allocation10_spill]] (!%p1737_p2) }
  0x23   : > { %v674_v0 = vld [vmem:[%s2345_s1] sm:$0xf]  ;;  %vm686_vm0 = vcmask 1043456   ;;  %vm679_vm1 = vcmask 31744   ;;  %v1837_v3 = vld [vmem:[#allocation3] ss:$0 sm:$0xff] }
  0x24   : > { %1750 = vmatpush.msk.msra.mxu0 %vm686_vm0, %v674_v0  ;;  %1794 = vmatpush.msk.msra.mxu1 %vm686_vm0, %v674_v0  ;;  %vm713_vm2 = vcmask 261120  }
  0x26   : > { %v672_v1 = vld [vmem:[%s2375_s24] sm:$0xff]  ;;  %v673_v2 = vld [vmem:[%s2375_s24 + $0x8] sm:$0xff] }
  0x27   : > { %1751 = vmatmul.msk.f32.vlgmr.msra.gmra.mxu0 %vm679_vm1, %v672_v1  ;;  %1752 = vmatmul.msk.f32.vlgmr.msra.gmra.mxu1 %vm679_vm1, %v673_v2 }
  0xa4   : > { %v707_v4 = vpop.f32.mrf.mxu0  ;;  %v710_v5 = vpop.f32.mrf.mxu1 }
  0xa5   : > { %v708_v6 = vadd.f32 %v1837_v3, %v707_v4  ;;  %v711_v7 = vadd.f32 %v1837_v3, %v710_v5 }
  0xa7   : > { %714 = vst.msk [vmem:[#allocation2] sm:$0xff] %vm713_vm2, %v708_v6 }
  0xa8   : > { %715 = vst.msk [vmem:[#allocation2 + $0x8] sm:$0xff] %vm713_vm2, %v711_v7 }
  0xa9 PF: > { %v721_v8 = vld [vmem:[%s2092_s17 + $0x18] sm:$0xff]  ;;  %v720_v9 = vld [vmem:[%s2092_s17 + $0x10] sm:$0xff]  ;;  %v719_v10 = vld [vmem:[%s2092_s17 + $0x8] sm:$0xff]  ;;  %vm726_vm3 = vcmask 261120   ;;  %s2376_s28 = scalar_lea.vmem %s2348_s4, %s2082_s25  ;;  %s1969_s3 = smov 96   ;;  %vm759_vm4 = vcmask 64512  }
  0xaa   : > { %745 = vmatpush.msra.mxu0 %v721_v8  ;;  %v718_v11 = vld [vmem:[%s2092_s17] sm:$0xff]  ;;  %s1968_s17 = smov 64   ;;  %s1970_s5 = smov 88   ;;  %vm1309_vm5 = vcmask 130048   ;;  %vm1312_vm6 = vcmask 195584   ;;  %vm1468_vm14 = vcmask 523264  }
  0xab   : > { %v1843_v14 = vld [vmem:[%s2376_s28] ss:$0 sm:$0xff]  ;;  %s1971_s16 = smov 120   ;;  %s1972_s2 = smov 72  }
  0xac   : > { %746 = vmatpush.msra.mxu0 %v720_v9  ;;  %s1973_s21 = smov 80   ;;  %s1974_s18 = smov 112  }
  0xad   : > { %s1975_s26 = smov 104   ;;  %s1976_s8 = smov 56  }
  0xae   : > { %747 = vmatpush.msra.mxu0 %v719_v10  ;;  %v2153_v12 = vld [vmem:[#allocation2] sm:$0xff]  ;;  %s1977_s27 = smov 40   ;;  %s1978_s28 = smov 48  }
  0xaf   : > { %v2157_v13 = vld [vmem:[#allocation2 + $0x8] sm:$0xff]  ;;  %p1785_p8 = scmp.ne.s32.totalorder %s2071_s19, 1 }
  0xb0   : > { %748 = vmatpush.msra.mxu0 %v718_v11 }
  0xb1   : > { %1753 = vmatmul.msk.f32.vlgmr.msra.gmra.mxu0 %vm726_vm3, %v2153_v12 }
  0xb9   : > { %1754 = vmatmul.msk.f32.gmra.mxu0 %vm726_vm3, %v2157_v13 }
 0x12e   : > { %v750_v15 = vpop.f32.mrf.mxu0 }
 0x12f   : > { %v2166_v16 = vadd.f32 %v1843_v14, %v750_v15 }
 0x131   : > { %835 = vrot.lane.b32.xlu2 %v2166_v16, %s1968_s17  ;;  %757 = vrot.lane.b32.xlu0 %v2166_v16, %s1969_s3 }
 0x136   : > { %v753_v17 = vpop.f32.mrf.mxu0 }
 0x137   : > { %v2171_v18 = vadd.f32 %v1843_v14, %v753_v17 }
 0x139   : > { %785 = vrot.lane.b32.xlu1 %v2171_v18, %s1969_s3  ;;  %917 = vrot.lane.b32.xlu2 %v2171_v18, %s1970_s5  ;;  %s1980_s3 = smov 16  }
 0x141   : > { %887 = vrot.lane.b32.xlu1 %v2166_v16, %s1971_s16  ;;  %915 = vrot.lane.b32.xlu2 %v2171_v18, %s1971_s16 }
 0x149   : > { %1153 = vrot.lane.b32.xlu1 %v2166_v16, %s1972_s2  ;;  %889 = vrot.lane.b32.xlu2 %v2166_v16, %s1970_s5  ;;  %s1981_s5 = smov 24  }
 0x151   : > { %1021 = vrot.lane.b32.xlu2 %v2166_v16, %s1973_s21 }
 0x159   : > { %1019 = vrot.lane.b32.xlu2 %v2166_v16, %s1974_s18 }
 0x161   : > { %1151 = vrot.lane.b32.xlu2 %v2166_v16, %s1975_s26 }
 0x169   : > { %1181 = vrot.lane.b32.xlu2 %v2171_v18, %s1972_s2  ;;  %s2377_s2 = scalar_lea.vmem %s2350_s6, %s2082_s25 }
 0x18b   : > { %v836_v19 = vpop.permute.xlu2 %835 }
 0x193   : > { %v918_v20 = vpop.permute.xlu2 %917 }
 0x19b   : > { %v916_v21 = vpop.permute.xlu2 %915 }
 0x1a3   : > { %v758_v22 = vpop.permute.xlu0 %757  ;;  %v890_v23 = vpop.permute.xlu2 %889 }
 0x1a4   : > { %1755 = vmatpush.xpose.msk.msra.mxu1 %vm759_vm4, %v758_v22 }
 0x1a7   : > { %1756 = vmatmul.msk.f32.vlgmr.msra.gmra.mxu1 %vm759_vm4, %v2166_v16 }
 0x1a8   : > { %856 = vmatpush.msrb.mxu1 %v836_v19 }
 0x1aa   : > { %1761 = vmatpush.xpose.msk.msra.mxu1 %vm759_vm4, %v890_v23 }
 0x1ab   : > { %v786_v24 = vpop.permute.xlu1 %785  ;;  %v1022_v25 = vpop.permute.xlu2 %1021 }
 0x1ac   : > { %1757 = vmatpush.xpose.msk.msra.mxu2 %vm759_vm4, %v786_v24 }
 0x1af   : > { %1758 = vmatmul.msk.f32.vlgmr.msra.gmra.mxu2 %vm759_vm4, %v2171_v18 }
 0x1b0   : > { %1763 = vmatpush.xpose.msk.msrb.mxu2 %vm759_vm4, %v918_v20 }
 0x1b3   : > { %v888_v26 = vpop.permute.xlu1 %887  ;;  %v1020_v28 = vpop.permute.xlu2 %1019 }
 0x1b4   : > { %1767 = vmatpush.xpose.msk.msra.mxu2 %vm759_vm4, %v1022_v25 }
 0x1b7   : > { %1764 = vmatmul.msk.f32.vlgmr.msrb.gmra.mxu2 %vm759_vm4, %v916_v21  ;;  %v1838_v21 = vpack.i.bf16 %v2171_v18, %v2166_v16 }
 0x1bb   : > { %v1154_v27 = vpop.permute.xlu1 %1153  ;;  %v1152_v29 = vpop.permute.xlu2 %1151 }
 0x1bc   : > { %1773 = vmatpush.xpose.msk.msrb.mxu2 %vm759_vm4, %v1154_v27 }
 0x1bf   : > { %1768 = vmatmul.msk.f32.vlgmr.msra.gmra.mxu2 %vm759_vm4, %v1020_v28 }
 0x1c3   : > { %v1182_v51 = vpop.permute.xlu2 %1181 }
 0x1c7   : > { %1774 = vmatmul.msk.f32.vlgmr.msrb.gmra.mxu2 %vm759_vm4, %v1152_v29 }
 0x224   : > { %v781_v30 = vpop.f32.mrf.mxu1 }
 0x225   : > { %v811_v31 = vmul.f32 0.35355338, %v781_v30 }
 0x227   : > { %v813_v32 = vsel %vm759_vm4, %v811_v31, -inf }
 0x228   : > { %814 = vmax.xlane.f32.xlu0 %v813_v32 }
 0x232   : > { %v808_v33 = vpop.f32.mrf.mxu2 }
 0x233   : > { %v812_v34 = vmul.f32 0.35355338, %v808_v33 }
 0x235   : > { %v816_v35 = vsel %vm759_vm4, %v812_v34, -inf }
 0x236   : > { %817 = vmax.xlane.f32.xlu2 %v816_v35 }
 0x23a   : > { %v940_v36 = vpop.f32.mrf.mxu2 }
 0x23b   : > { %v944_v45 = vmul.f32 0.35355338, %v940_v36 }
 0x23c   : > { %1047 = vrot.lane.b32.xlu0 %v2171_v18, %s1974_s18 }
 0x23d   : > { %v948_v46 = vsel %vm759_vm4, %v944_v45, -inf }
 0x23e   : > { %949 = vmax.xlane.f32.xlu2 %v948_v46 }
 0x242   : > { %v1044_v37 = vpop.f32.mrf.mxu2 }
 0x243   : > { %v1075_v38 = vmul.f32 0.35355338, %v1044_v37 }
 0x245   : > { %v1077_v39 = vsel %vm759_vm4, %v1075_v38, -inf }
 0x24a   : > { %v1176_v60 = vpop.f32.mrf.mxu2 }
 0x24b   : > { %v1207_v62 = vmul.f32 0.35355338, %v1176_v60 }
 0x24d   : > { %v1209_v3 = vsel %vm759_vm4, %v1207_v62, -inf }
 0x266   : > { %1078 = vmax.xlane.f32.xlu0 %v1077_v39 }
 0x29b   : > { %v815_v40 = vpop.xlane.xlu0 %814 }
 0x29c   : > { %v819_v41 = vsub.f32 %v811_v31, %v815_v40 }
 0x29e   : > { %v821_v42 = vmul.f32 1.442695, %v819_v41 }
 0x2a0   : > { %1851 = vpow2.f32 %v821_v42 }
 0x2a6   : > { %v1852_v43 = vpop.eup %1851 }
 0x2a7   : > { %v825_v44 = vsel %vm759_vm4, %v1852_v43, 0.0 }
 0x2a8   : > { %826 = vadd.xlane.f32.xlu1 %v825_v44 }
 0x2a9   : > { %v818_v55 = vpop.xlane.xlu2 %817 }
 0x2aa   : > { %v820_v58 = vsub.f32 %v812_v34, %v818_v55 }
 0x2ac   : > { %v823_v61 = vmul.f32 1.442695, %v820_v58 }
 0x2ae   : > { %v1048_v52 = vpop.permute.xlu0 %1047 }
 0x2b1   : > { %v950_v6 = vpop.xlane.xlu2 %949 }
 0x2b2   : > { %v952_v8 = vsub.f32 %v944_v45, %v950_v6 }
 0x2b4   : > { %v955_v15 = vmul.f32 1.442695, %v952_v8 }
 0x2c1   : > { %1049 = vrot.lane.b32.xlu1 %v2171_v18, %s1973_s21 }
 0x2c9   : > { %1179 = vrot.lane.b32.xlu1 %v2171_v18, %s1975_s26 }
 0x2d9   : > { %v1079_v63 = vpop.xlane.xlu0 %1078 }
 0x2da   : > { %v1083_v0 = vsub.f32 %v1075_v38, %v1079_v63 }
 0x2dc   : > { %v1085_v5 = vmul.f32 1.442695, %v1083_v0 }
 0x31b   : > { %v827_v47 = vpop.xlane.xlu1 %826 }
 0x31c   : > { %1853 = vrcp.f32 %v827_v47 }
 0x31d   : > { %1855 = vpow2.f32 %v823_v61 }
 0x31e   : > { %1857 = vpow2.f32 %v1085_v5 }
 0x31f   : > { %1859 = vpow2.f32 %v955_v15 }
 0x322   : > { %v1854_v48 = vpop.eup %1853 }
 0x323   : > { %v833_v49 = vmul.f32 %v1854_v48, %v1852_v43  ;;  %v1856_v7 = vpop.eup %1855 }
 0x324   : > { %v828_v11 = vsel %vm759_vm4, %v1856_v7, 0.0  ;;  %v2223_v17 = vpop.eup %1857 }
 0x325   : > { %1759 = vmatmul.msk.f32.vlgmr.msrb.gmra.mxu1 %vm759_vm4, %v833_v49  ;;  %v1089_v19 = vsel %vm759_vm4, %v2223_v17, 0.0  ;;  %v1860_v20 = vpop.eup %1859 }
 0x326   : > { %v960_v22 = vsel %vm759_vm4, %v1860_v20, 0.0 }
 0x32d   : > { %1762 = vmatmul.msk.f32.vlgmr.msra.gmra.mxu1 %vm759_vm4, %v888_v26 }
 0x333   : > { %v1050_v50 = vpop.permute.xlu1 %1049 }
 0x334   : > { %1769 = vmatpush.xpose.msk.msrb.mxu0 %vm759_vm4, %v1050_v50 }
 0x337   : > { %1770 = vmatmul.msk.f32.vlgmr.msrb.gmra.mxu0 %vm759_vm4, %v1048_v52 }
 0x338   : > { %1775 = vmatpush.xpose.msk.msra.mxu0 %vm759_vm4, %v1182_v51 }
 0x33b   : > { %v1180_v53 = vpop.permute.xlu1 %1179 }
 0x33f   : > { %1776 = vmatmul.msk.f32.vlgmr.msra.gmra.mxu0 %vm759_vm4, %v1180_v53 }
 0x3a2   : > { %v2216_v54 = vpop.f32.mrf.mxu1 }
 0x3aa   : > { %v912_v56 = vpop.f32.mrf.mxu1 }
 0x3ab   : > { %v943_v57 = vmul.f32 0.35355338, %v912_v56 }
 0x3ad   : > { %v945_v59 = vsel %vm759_vm4, %v943_v57, -inf }
 0x3ae   : > { %946 = vmax.xlane.f32.xlu1 %v945_v59 }
 0x3b4   : > { %v1072_v1 = vpop.f32.mrf.mxu0 }
 0x3b5   : > { %v1076_v2 = vmul.f32 0.35355338, %v1072_v1 }
 0x3b6   : > { %1210 = vmax.xlane.f32.xlu1 %v1209_v3 }
 0x3b7   : > { %v1080_v4 = vsel %vm759_vm4, %v1076_v2, -inf }
 0x3b8   : > { %1081 = vmax.xlane.f32.xlu0 %v1080_v4 }
 0x3bc   : > { %v1204_v9 = vpop.f32.mrf.mxu0 }
 0x3bd   : > { %v1208_v10 = vmul.f32 0.35355338, %v1204_v9 }
 0x3be   : > { %829 = vadd.xlane.f32.xlu1 %v828_v11 }
 0x3bf   : > { %v1212_v14 = vsel %vm759_vm4, %v1208_v10, -inf }
 0x3c0   : > { %1213 = vmax.xlane.f32.xlu2 %v1212_v14 }
 0x3c6   : > { %1090 = vadd.xlane.f32.xlu1 %v1089_v19  ;;  %v1317_v19 = vld [vmem:[%s2097_s22 + $0x10] sm:$0xff] }
 0x3cc   : > { %1839 = vrot.lane.b32.xlu0 %v1838_v21, %s1976_s8  ;;  %v1315_v21 = vld [vmem:[%s2097_s22] sm:$0xff]  ;;  %s2378_s8 = sld [smem:[#allocation15_spill]] }
 0x3ce   : > { %961 = vadd.xlane.f32.xlu1 %v960_v22 }
 0x3d4   : > { %1231 = vrot.lane.b32.xlu0 %v2166_v16, %s1977_s27 }
 0x3d8   : > { %861 = vrot.lane.b32.xlu2 %v2171_v18, %s1968_s17  ;;  %s1979_s17 = smov 8  }
 0x3e0   : > { %1099 = vrot.lane.b32.xlu2 %v2166_v16, %s1978_s28 }
 0x421   : > { %v947_v23 = vpop.xlane.xlu1 %946 }
 0x422   : > { %v951_v24 = vsub.f32 %v943_v57, %v947_v23 }
 0x424   : > { %v953_v25 = vmul.f32 1.442695, %v951_v24 }
 0x426   : > { %1861 = vpow2.f32 %v953_v25 }
 0x429   : > { %v1211_v26 = vpop.xlane.xlu1 %1210 }
 0x42a   : > { %v1215_v27 = vsub.f32 %v1207_v62, %v1211_v26 }
 0x42b   : > { %v1082_v28 = vpop.xlane.xlu0 %1081 }
 0x42c   : > { %v1862_v29 = vpop.eup %1861  ;;  %v1217_v30 = vmul.f32 1.442695, %v1215_v27  ;;  %v1084_v31 = vsub.f32 %v1076_v2, %v1082_v28 }
 0x42d   : > { %v957_v32 = vsel %vm759_vm4, %v1862_v29, 0.0 }
 0x42e   : > { %1863 = vpow2.f32 %v1217_v30  ;;  %958 = vadd.xlane.f32.xlu0 %v957_v32  ;;  %v1087_v33 = vmul.f32 1.442695, %v1084_v31 }
 0x431   : > { %v830_v34 = vpop.xlane.xlu1 %829 }
 0x432   : > { %1865 = vrcp.f32 %v830_v34  ;;  %v1844_v34 = vld [vmem:[%s2377_s2] ss:$0 sm:$0xff] }
 0x433   : > { %v1214_v35 = vpop.xlane.xlu2 %1213  ;;  %1867 = vpow2.f32 %v1087_v33 }
 0x434   : > { %v1864_v36 = vpop.eup %1863  ;;  %v1216_v16 = vsub.f32 %v1208_v10, %v1214_v35 }
 0x435   : > { %v1221_v37 = vsel %vm759_vm4, %v1864_v36, 0.0 }
 0x436   : > { %v1219_v38 = vmul.f32 1.442695, %v1216_v16  ;;  %1222 = vadd.xlane.f32.xlu1 %v1221_v37 }
 0x438   : > { %v1866_v39 = vpop.eup %1865  ;;  %1869 = vpow2.f32 %v1219_v38 }
 0x439   : > { %v1091_v40 = vpop.xlane.xlu1 %1090  ;;  %v1868_v41 = vpop.eup %1867  ;;  %v834_v43 = vmul.f32 %v1866_v39, %v1856_v7 }
 0x43a   : > { %v1092_v44 = vsel %vm759_vm4, %v1868_v41, 0.0 }
 0x43b   : > { %v862_v42 = vpop.permute.xlu2 %861 }
 0x43c   : > { %882 = vmatpush.msra.mxu3 %v862_v42 }
 0x43d   : > { %1760 = vmatmul.msk.f32.vlgmr.msra.gmra.mxu3 %vm759_vm4, %v834_v43 }
 0x43e   : > { %v1870_v45 = vpop.eup %1869  ;;  %1093 = vadd.xlane.f32.xlu1 %v1092_v44  ;;  %v1840_v46 = vpop.permute.xlu0 %1839 }
 0x43f   : > { %v1842_v47 = vunpack.i.h.bf16 %v1840_v46  ;;  %v1224_v48 = vsel %vm759_vm4, %v1870_v45, 0.0  ;;  %v1841_v49 = vunpack.i.l.bf16 %v1840_v46 }
 0x440   : > { %1225 = vadd.xlane.f32.xlu2 %v1224_v48 }
 0x441   : > { %v962_v50 = vpop.xlane.xlu1 %961  ;;  %988 = vmatpush.msrb.mxu3 %v1841_v49  ;;  %1014 = vmatpush.msrb.mxu1 %v1842_v47 }
 0x442   : > { %1871 = vrcp.f32 %v962_v50  ;;  %1257 = vrot.lane.b32.xlu0 %v2171_v18, %s1977_s27  ;;  %s2379_s27 = scalar_lea.vmem %s2378_s8, %s2082_s25 }
 0x443   : > { %v1100_v51 = vpop.permute.xlu2 %1099 }
 0x444   : > { %1120 = vmatpush.msra.mxu3 %v1100_v51 }
 0x446   : > { %v1232_v55 = vpop.permute.xlu0 %1231 }
 0x448   : > { %v1872_v52 = vpop.eup %1871 }
 0x449   : > { %v966_v53 = vmul.f32 %v1872_v52, %v1860_v20  ;;  %v1316_v20 = vld [vmem:[%s2097_s22 + $0x8] sm:$0xff] }
 0x44b   : > { %1766 = vmatmul.msk.f32.vlgmr.msrb.gmra.mxu1 %vm759_vm4, %v966_v53 }
 0x457   : > { %1125 = vrot.lane.b32.xlu1 %v2171_v18, %s1978_s28 }
 0x4a1   : > { %v959_v56 = vpop.xlane.xlu0 %958 }
 0x4a2   : > { %1873 = vrcp.f32 %v959_v56 }
 0x4a3   : > { %1875 = vrcp.f32 %v1091_v40 }
 0x4a8   : > { %v1874_v57 = vpop.eup %1873 }
 0x4a9   : > { %v965_v58 = vmul.f32 %v1874_v57, %v1862_v29  ;;  %v1223_v59 = vpop.xlane.xlu1 %1222  ;;  %v1876_v60 = vpop.eup %1875  ;;  %v1420_v57 = vld [vmem:[%s2106_s0 + $0x18] sm:$0xff] }
 0x4aa   : > { %1877 = vrcp.f32 %v1223_v59  ;;  %v1097_v61 = vmul.f32 %v1876_v60, %v2223_v17  ;;  %v1318_v17 = vld [vmem:[%s2097_s22 + $0x18] sm:$0xff]  ;;  %1443 = vmatpush.msrb.mxu0 %v1420_v57  ;;  %v1418_v59 = vld [vmem:[%s2106_s0 + $0x8] sm:$0xff]  ;;  %v1417_v60 = vld [vmem:[%s2106_s0] sm:$0xff] }
 0x4ab   : > { %1765 = vmatmul.msk.f32.vlgmr.msrb.gmra.mxu3 %vm759_vm4, %v965_v58  ;;  %1341 = vmatpush.msra.mxu2 %v1318_v17  ;;  %v1419_v58 = vld [vmem:[%s2106_s0 + $0x10] sm:$0xff] }
 0x4ac   : > { %1252 = vmatpush.msrb.mxu3 %v1232_v55  ;;  %1444 = vmatpush.msrb.mxu0 %v1419_v58 }
 0x4ad   : > { %1342 = vmatpush.msra.mxu2 %v1317_v19 }
 0x4ae   : > { %1445 = vmatpush.msrb.mxu0 %v1418_v59 }
 0x4af   : > { %1343 = vmatpush.msra.mxu2 %v1316_v20  ;;  %v1846_v20 = vld [vmem:[%s661_s7] ss:$0 sm:$0xff] }
 0x4b0   : > { %v1878_v62 = vpop.eup %1877  ;;  %1446 = vmatpush.msrb.mxu0 %v1417_v60 }
 0x4b1   : > { %v1229_v63 = vmul.f32 %v1878_v62, %v1864_v36  ;;  %v1094_v18 = vpop.xlane.xlu1 %1093  ;;  %1344 = vmatpush.msra.mxu2 %v1315_v21 }
 0x4b2   : > { %1879 = vrcp.f32 %v1094_v18 }
 0x4b3   : > { %1771 = vmatmul.msk.f32.vlgmr.msra.gmra.mxu3 %vm759_vm4, %v1097_v61  ;;  %v1226_v0 = vpop.xlane.xlu2 %1225 }
 0x4b4   : > { %1881 = vrcp.f32 %v1226_v0  ;;  %v1258_v5 = vpop.permute.xlu0 %1257 }
 0x4b8   : > { %v1880_v1 = vpop.eup %1879 }
 0x4b9   : > { %v1098_v3 = vmul.f32 %v1880_v1, %v1868_v41  ;;  %v1982_v41 = vmov 32.0  }
 0x4ba   : > { %v1882_v6 = vpop.eup %1881  ;;  %1883 = vrcp.f32 %v1982_v41  ;;  %v1848_v41 = vld [vmem:[%s655_s23] ss:$0 sm:$0xff] }
 0x4bb   : > { %1777 = vmatmul.msk.f32.vlgmr.msrb.gmra.mxu3 %vm759_vm4, %v1229_v63  ;;  %v1230_v7 = vmul.f32 %v1882_v6, %v1870_v45 }
 0x4c0   : > { %v884_v8 = vpop.f32.mrf.mxu3  ;;  %v1884_v42 = vpop.eup %1883 }
 0x4c1   : > { %v1363_v43 = vmul.f32 32.0, %v1884_v42  ;;  %vm1367_vm7 = vweird.f32 %v1884_v42 }
 0x4c3   : > { %v1364_v44 = vsub.f32 1.0, %v1363_v43 }
 0x4c5   : > { %v1365_v45 = vmul.f32 %v1884_v42, %v1364_v44 }
 0x4c7   : > { %v1366_v46 = vadd.f32 %v1884_v42, %v1365_v45 }
 0x4c8   : > { %v1016_v2 = vpop.f32.mrf.mxu1 }
 0x4c9   : > { %v1126_v4 = vpop.permute.xlu1 %1125  ;;  %1287 = vrot.lane.b32.xlu1 %v1016_v2, %s1979_s17  ;;  %v1463_v2 = vld [vmem:[%s2116_s20 + $0x38] sm:$0xff] }
 0x4ca   : > { %1146 = vmatpush.msra.mxu1 %v1126_v4  ;;  %1483 = vmatpush.msra.mxu3 %v1463_v2 }
 0x4cb   : > { %1772 = vmatmul.msk.f32.vlgmr.msra.gmra.mxu1 %vm759_vm4, %v1098_v3  ;;  %v1462_v3 = vld [vmem:[%s2116_s20 + $0x30] sm:$0xff] }
 0x4cc   : > { %1278 = vmatpush.msrb.mxu1 %v1258_v5  ;;  %v1461_v5 = vld [vmem:[%s2116_s20 + $0x28] sm:$0xff]  ;;  %1484 = vmatpush.msra.mxu3 %v1462_v3 }
 0x4ce   : > { %1485 = vmatpush.msra.mxu3 %v1461_v5 }
 0x4d3   : > { %1778 = vmatmul.msk.f32.vlgmr.msrb.gmra.mxu1 %vm759_vm4, %v1230_v7 }
 0x52e   : > { %v990_v9 = vpop.f32.mrf.mxu3 }
 0x52f   : > { %1285 = vrot.lane.b32.xlu0 %v990_v9, %s1979_s17  ;;  %v1460_v9 = vld [vmem:[%s2116_s20 + $0x20] sm:$0xff] }
 0x530   : > { %1486 = vmatpush.msra.mxu3 %v1460_v9  ;;  %v1850_v9 = vld [vmem:[%s667_s29] ss:$0 sm:$0xff] }
 0x536   : > { %v1122_v10 = vpop.f32.mrf.mxu3 }
 0x537   : > { %1293 = vrot.lane.b32.xlu0 %v1122_v10, %s1980_s3 }
 0x53b   : > { %v1288_v28 = vpop.permute.xlu1 %1287 }
 0x53c   : > { %v1308_v30 = vsel %vm759_vm4, %v884_v8, %v1288_v28 }
 0x53e   : > { %v1254_v11 = vpop.f32.mrf.mxu3 }
 0x53f   : > { %1301 = vrot.lane.b32.xlu0 %v1254_v11, %s1981_s5  ;;  %v1845_v11 = vld [vmem:[%s658_s15] ss:$0 sm:$0xff] }
 0x548   : > { %v1148_v14 = vpop.f32.mrf.mxu1 }
 0x549   : > { %1295 = vrot.lane.b32.xlu0 %v1148_v14, %s1980_s3 }
 0x550   : > { %v1280_v15 = vpop.f32.mrf.mxu1 }
 0x551   : > { %1303 = vrot.lane.b32.xlu1 %v1280_v15, %s1981_s5  ;;  %v1459_v15 = vld [vmem:[%s2116_s20 + $0x18] sm:$0xff] }
 0x552   : > { %1487 = vmatpush.msra.mxu3 %v1459_v15 }
 0x5a1   : > { %v1286_v22 = vpop.permute.xlu0 %1285 }
 0x5a2   : > { %v1307_v24 = vsel %vm759_vm4, %v2216_v54, %v1286_v22 }
 0x5a9   : > { %v1294_v23 = vpop.permute.xlu0 %1293 }
 0x5aa   : > { %v1310_v25 = vsel %vm1309_vm5, %v1307_v24, %v1294_v23 }
 0x5b1   : > { %v1302_v26 = vpop.permute.xlu0 %1301 }
 0x5b2   : > { %v1313_v27 = vsel %vm1312_vm6, %v1310_v25, %v1302_v26 }
 0x5b3   : > { %1779 = vmatmul.msk.f32.vlgmr.msra.gmra.mxu2 %vm726_vm3, %v1313_v27 }
 0x5bb   : > { %v1296_v29 = vpop.permute.xlu0 %1295 }
 0x5bc   : > { %v1311_v31 = vsel %vm1309_vm5, %v1308_v30, %v1296_v29 }
 0x5c3   : > { %v1304_v32 = vpop.permute.xlu1 %1303 }
 0x5c4   : > { %v1314_v33 = vsel %vm1312_vm6, %v1311_v31, %v1304_v32 }
 0x5c5   : > { %1780 = vmatmul.msk.f32.gmra.mxu2 %vm726_vm3, %v1314_v33  ;;  %v1458_v33 = vld [vmem:[%s2116_s20 + $0x10] sm:$0xff] }
 0x5c6   : > { %1488 = vmatpush.msra.mxu3 %v1458_v33 }
 0x636   : > { %v1346_v54 = vpop.f32.mrf.mxu2 }
 0x637   : > { %v1347_v35 = vadd.f32 %v1844_v34, %v1346_v54  ;;  %v1456_v54 = vld [vmem:[%s2116_s20] sm:$0xff] }
 0x639   : > { %v1352_v36 = vadd.f32 %v1347_v35, %v2153_v12  ;;  %v2272_v12 = vsel %vm1367_vm7, %v1884_v42, %v1366_v46  ;;  %v1847_v35 = vld [vmem:[%s2379_s27] ss:$0 sm:$0xff] }
 0x63b   : > { %v1356_v16 = vsel %vm726_vm3, %v1352_v36, 0.0 }
 0x63c   : > { %1357 = vadd.xlane.f32.xlu2 %v1356_v16 }
 0x648   : > { %v1349_v37 = vpop.f32.mrf.mxu2 }
 0x649   : > { %v1350_v38 = vadd.f32 %v1844_v34, %v1349_v37  ;;  %v1457_v34 = vld [vmem:[%s2116_s20 + $0x8] sm:$0xff] }
 0x64a   : > { %1489 = vmatpush.msra.mxu3 %v1457_v34 }
 0x64b   : > { %v1353_v39 = vadd.f32 %v1350_v38, %v2157_v13 }
 0x64c   : > { %1490 = vmatpush.msra.mxu3 %v1456_v54 }
 0x64d   : > { %v1359_v40 = vsel %vm726_vm3, %v1353_v39, 0.0 }
 0x64e   : > { %1360 = vadd.xlane.f32.xlu0 %v1359_v40 }
 0x6af   : > { %v1358_v47 = vpop.xlane.xlu2 %1357 }
 0x6b0   : > { %v1369_v48 = vmul.f32 %v2272_v12, %v1358_v47 }
 0x6b2   : > { %v1371_v13 = vsub.f32 %v1352_v36, %v1369_v48 }
 0x6b4   : > { %v1373_v49 = vmul.f32 %v1371_v13, %v1371_v13 }
 0x6b6   : > { %v1375_v50 = vsel %vm726_vm3, %v1373_v49, 0.0 }
 0x6b7   : > { %1376 = vadd.xlane.f32.xlu1 %v1375_v50 }
 0x6c1   : > { %v1361_v51 = vpop.xlane.xlu0 %1360 }
 0x6c2   : > { %v1370_v52 = vmul.f32 %v2272_v12, %v1361_v51 }
 0x6c4   : > { %v1372_v53 = vsub.f32 %v1353_v39, %v1370_v52 }
 0x6c6   : > { %v1374_v55 = vmul.f32 %v1372_v53, %v1372_v53 }
 0x6c8   : > { %v1378_v56 = vsel %vm726_vm3, %v1374_v55, 0.0 }
 0x6c9   : > { %1379 = vadd.xlane.f32.xlu2 %v1378_v56 }
 0x72a   : > { %v1377_v61 = vpop.xlane.xlu1 %1376 }
 0x72b   : > { %v1381_v62 = vmul.f32 %v1377_v61, %v2272_v12 }
 0x72d   : > { %v1383_v63 = vadd.f32 1e-05, %v1381_v62 }
 0x72f   : > { %1885 = vrsqrt.f32 %v1383_v63  ;;  %vm1391_vm9 = vweird.f32 %v1383_v63 }
 0x735   : > { %v1886_v18 = vpop.eup %1885 }
 0x736   : > { %v1386_v0 = vmul.f32 %v1886_v18, %v1383_v63  ;;  %vm1392_vm8 = vweird.f32 %v1886_v18 }
 0x737   : > { %vm1393_vm10 = vmor %vm1391_vm9, %vm1392_vm8 }
 0x738   : > { %v1387_v1 = vmul.f32 %v1886_v18, %v1386_v0 }
 0x73a   : > { %v1388_v4 = vmul.f32 0.5, %v1387_v1 }
 0x73c   : > { %v1389_v6 = vsub.f32 1.5, %v1388_v4  ;;  %v1380_v7 = vpop.xlane.xlu2 %1379 }
 0x73d   : > { %v1382_v8 = vmul.f32 %v1380_v7, %v2272_v12 }
 0x73e   : > { %v1390_v10 = vmul.f32 %v1886_v18, %v1389_v6  ;;  %v1849_v6 = vld [vmem:[%s664_s30] ss:$0 sm:$0xff] }
 0x73f   : > { %v1384_v14 = vadd.f32 1e-05, %v1382_v8 }
 0x740   : > { %v1394_v17 = vsel %vm1393_vm10, %v1886_v18, %v1390_v10 }
 0x741   : > { %v1405_v19 = vmul.f32 %v1394_v17, %v1371_v13  ;;  %1887 = vrsqrt.f32 %v1384_v14  ;;  %vm1401_vm12 = vweird.f32 %v1384_v14 }
 0x743   : > { %v1410_v21 = vmul.f32 %v1845_v11, %v1405_v19 }
 0x745   : > { %v1415_v22 = vadd.f32 %v1846_v20, %v1410_v21 }
 0x747   : > { %v1888_v23 = vpop.eup %1887  ;;  %1781 = vmatmul.msk.f32.vlgmr.msrb.gmra.mxu0 %vm726_vm3, %v1415_v22 }
 0x748   : > { %v1396_v24 = vmul.f32 %v1888_v23, %v1384_v14  ;;  %vm1402_vm11 = vweird.f32 %v1888_v23 }
 0x749   : > { %vm1403_vm13 = vmor %vm1401_vm12, %vm1402_vm11 }
 0x74a   : > { %v1397_v25 = vmul.f32 %v1888_v23, %v1396_v24 }
 0x74c   : > { %v1398_v26 = vmul.f32 0.5, %v1397_v25 }
 0x74e   : > { %v1399_v27 = vsub.f32 1.5, %v1398_v26 }
 0x750   : > { %v1400_v28 = vmul.f32 %v1888_v23, %v1399_v27 }
 0x752   : > { %v1404_v29 = vsel %vm1403_vm13, %v1888_v23, %v1400_v28 }
 0x753   : > { %v1406_v30 = vmul.f32 %v1404_v29, %v1372_v53 }
 0x755   : > { %v1411_v31 = vmul.f32 %v1845_v11, %v1406_v30 }
 0x757   : > { %v1416_v32 = vadd.f32 %v1846_v20, %v1411_v31 }
 0x759   : > { %1782 = vmatmul.msk.f32.gmra.mxu0 %vm726_vm3, %v1416_v32 }
 0x7c4   : > { %v1448_v36 = vpop.f32.mrf.mxu0 }
 0x7c5   : > { %v1449_v16 = vadd.f32 %v1847_v35, %v1448_v36 }
 0x7c7   : > { %v1454_v37 = vmax.f32 %v1449_v16, 0.0 }
 0x7c9   : > { %1783 = vmatmul.msk.f32.vlgmr.msra.gmra.mxu3 %vm1468_vm14, %v1454_v37 }
 0x7d6   : > { %v1451_v38 = vpop.f32.mrf.mxu0 }
 0x7d7   : > { %v1452_v39 = vadd.f32 %v1847_v35, %v1451_v38 }
 0x7d9   : > { %v1455_v40 = vmax.f32 %v1452_v39, 0.0 }
 0x7db   : > { %1784 = vmatmul.msk.f32.gmra.mxu3 %vm1468_vm14, %v1455_v40 }
 0x84c   : > { %v1492_v42 = vpop.f32.mrf.mxu3 }
 0x84d   : > { %v1493_v43 = vadd.f32 %v1848_v41, %v1492_v42 }
 0x84f   : > { %v1498_v44 = vadd.f32 %v1493_v43, %v1415_v22 }
 0x851   : > { %v1502_v45 = vsel %vm726_vm3, %v1498_v44, 0.0 }
 0x852   : > { %1503 = vadd.xlane.f32.xlu2 %v1502_v45 }
 0x85e   : > { %v1495_v46 = vpop.f32.mrf.mxu3 }
 0x85f   : > { %v1496_v47 = vadd.f32 %v1848_v41, %v1495_v46 }
 0x861   : > { %v1499_v48 = vadd.f32 %v1496_v47, %v1416_v32 }
 0x863   : > { %v1505_v13 = vsel %vm726_vm3, %v1499_v48, 0.0 }
 0x864   : > { %1506 = vadd.xlane.f32.xlu2 %v1505_v13 }
 0x8c5   : > { %v1504_v49 = vpop.xlane.xlu2 %1503 }
 0x8c6   : > { %v1508_v50 = vmul.f32 %v1504_v49, %v2272_v12 }
 0x8c8   : > { %v1510_v51 = vsub.f32 %v1498_v44, %v1508_v50 }
 0x8ca   : > { %v1512_v52 = vmul.f32 %v1510_v51, %v1510_v51 }
 0x8cc   : > { %v1514_v53 = vsel %vm726_vm3, %v1512_v52, 0.0 }
 0x8cd   : > { %1515 = vadd.xlane.f32.xlu2 %v1514_v53 }
 0x8d7   : > { %v1507_v55 = vpop.xlane.xlu2 %1506 }
 0x8d8   : > { %v1509_v56 = vmul.f32 %v1507_v55, %v2272_v12 }
 0x8da   : > { %v1511_v57 = vsub.f32 %v1499_v48, %v1509_v56 }
 0x8dc   : > { %v1513_v58 = vmul.f32 %v1511_v57, %v1511_v57 }
 0x8de   : > { %v1517_v59 = vsel %vm726_vm3, %v1513_v58, 0.0 }
 0x8df   : > { %1518 = vadd.xlane.f32.xlu2 %v1517_v59 }
 0x940   : > { %v1516_v60 = vpop.xlane.xlu2 %1515 }
 0x941   : > { %v1520_v61 = vmul.f32 %v1516_v60, %v2272_v12 }
 0x943   : > { %v1522_v62 = vadd.f32 1e-05, %v1520_v61 }
 0x945   : > { %1889 = vrsqrt.f32 %v1522_v62  ;;  %vm1530_vm0 = vweird.f32 %v1522_v62 }
 0x94b   : > { %v1890_v63 = vpop.eup %1889 }
 0x94c   : > { %v1525_v18 = vmul.f32 %v1890_v63, %v1522_v62  ;;  %vm1531_vm15 = vweird.f32 %v1890_v63 }
 0x94d   : > { %vm1532_vm1 = vmor %vm1530_vm0, %vm1531_vm15 }
 0x94e   : > { %v1526_v0 = vmul.f32 %v1890_v63, %v1525_v18 }
 0x950   : > { %v1527_v1 = vmul.f32 0.5, %v1526_v0 }
 0x952   : > { %v1528_v2 = vsub.f32 1.5, %v1527_v1  ;;  %v1519_v3 = vpop.xlane.xlu2 %1518 }
 0x953   : > { %v1521_v4 = vmul.f32 %v1519_v3, %v2272_v12 }
 0x954   : > { %v1529_v5 = vmul.f32 %v1890_v63, %v1528_v2 }
 0x955   : > { %v1523_v7 = vadd.f32 1e-05, %v1521_v4 }
 0x956   : > { %v1533_v8 = vsel %vm1532_vm1, %v1890_v63, %v1529_v5 }
 0x957   : > { %v1544_v10 = vmul.f32 %v1533_v8, %v1510_v51  ;;  %1891 = vrsqrt.f32 %v1523_v7  ;;  %vm1540_vm4 = vweird.f32 %v1523_v7 }
 0x959   : > { %v1549_v11 = vmul.f32 %v1849_v6, %v1544_v10 }
 0x95b   : > { %v1554_v14 = vadd.f32 %v1850_v9, %v1549_v11 }
 0x95d   : > { %v1892_v12 = vpop.eup %1891  ;;  %1556 = vst.msk [vmem:[#allocation2] sm:$0xff] %vm726_vm3, %v1554_v14 }
 0x95e   : > { %v1535_v15 = vmul.f32 %v1892_v12, %v1523_v7  ;;  %vm1541_vm2 = vweird.f32 %v1892_v12 }
 0x95f   : > { %vm1542_vm5 = vmor %vm1540_vm4, %vm1541_vm2 }
 0x960   : > { %v1536_v17 = vmul.f32 %v1892_v12, %v1535_v15 }
 0x962   : > { %v1537_v19 = vmul.f32 0.5, %v1536_v17 }
 0x964   : > { %v1538_v20 = vsub.f32 1.5, %v1537_v19 }
 0x966   : > { %v1539_v21 = vmul.f32 %v1892_v12, %v1538_v20 }
 0x968   : > { %v1543_v22 = vsel %vm1542_vm5, %v1892_v12, %v1539_v21 }
 0x969   : > { %v1545_v23 = vmul.f32 %v1543_v22, %v1511_v57 }
 0x96b   : > { %v1550_v24 = vmul.f32 %v1849_v6, %v1545_v23  ;;  %1561 = sbr.rel (%p1785_p8) target bundleno = 2419 (0x973), region = 92 }
 0x96d   : > { %v1555_v25 = vadd.f32 %v1850_v9, %v1550_v24 }
 0x96f   : > { %1557 = vst.msk [vmem:[#allocation2 + $0x8] sm:$0xff] %vm726_vm3, %v1555_v25 }
 0x970   : > { %vm1562_vm6 = vcmask 253952  }
 0x971   : > { %1563 = vst.msk [vmem:[#allocation6] sm:$0x1] %vm1562_vm6, %v1554_v14 }
 0x972   : > { %1564 = vst.msk [vmem:[#allocation6 + $0x1] sm:$0x1] %vm1562_vm6, %v1555_v25 }
 0x973 PF: > { %p1809_p9 = scmp.eq.s32.totalorder %s2071_s19, 1  ;;  %s1983_s25 = smov [#allocation6]  }
 0x974   : > { %s1570_s30 = sshll.u32 %s1983_s25, 4  ;;  %s2380_s2 = sld [smem:[#allocation16_spill]]  ;;  %s1571_s30 = int_to_ptr.vmem [resolvable:$true] %s1570_s30 }
 0x975   : > { %s1984_s21 = smov 1  }
 0x97a   : > { %s1572_s0 = sshll.u32 %s2380_s2, 4  ;;  %s1573_s0 = int_to_ptr.hbm [resolvable:$true] %s1572_s0 }
 0x97b   : > { %1800 = dma.vmem_to_hbm [thread:$0]  (%p1809_p9), %s1571_s30, 32, %s1573_s0, [#allocation5], %s1980_s3, %s1980_s3, %s1984_s21  }
 0x97c   : > { %1960 = dma.done.wait (%p1809_p9), [#allocation5], 32  }
 0x97d   : > { %1962 = vsyncadd (%p1809_p9), [#allocation5], 4294967264 }
 0x97e PF: > { %s2381_s18 = sld [smem:[#allocation9_spill]] }
 0x984   : > { %s27_s18 = sadd.s32 1, %s2381_s18  }
 0x985   : > { %p24_p10 = scmp.ge.s32.totalorder %s27_s18, 4  }
 0x987   :  { %26 = sbr.rel (!%p24_p10) target bundleno = 10 (0xa), region = 153 }
 0x98c   :  { %1589 = vsyncpa [#allocation4], 1 }
 0x98d   :  { %1591 = vsyncpa [#allocation4 + $0x1], 1 }
 0x98e   :  { %1592 = vsyncpa [#allocation5], 1 }
 0x98f   :  { %1594 = vsyncpa [#allocation5 + $0x1], 1 }

</bundles_post_ra>
